<compile_context>
chip_gen: v7x
topology: tpu7x:2x2x1
jax: 0.10.0
libtpu: 0.0.40
codegen_flags: <defaults>
</compile_context>

<pallas_src>
import numpy as np
import jax
import jax.numpy as jnp
from jax.experimental import pallas as pl
from jax.experimental.pallas import tpu as pltpu


def _make_fused_kernel(E, C_pad):
    """Single-invocation fused ensemble forward.

    x_ref   : (B, D)            VMEM
    w1_ref  : (D, E*H)          VMEM  (members fused along lanes)
    b1_ref  : (1, E*H)          VMEM
    w2_ref  : (E*H, E*C_pad)    VMEM  (block-diagonal, zero-padded class lanes)
    b2_ref  : (1, E*C_pad)      VMEM  (-1e30 on pad-class lanes)
    mean_ref: (B, C_pad)        output (lane-dense)
    std_ref : (B, C_pad)        output (lane-dense)
    """

    def kernel(x_ref, w1_ref, b1_ref, w2_ref, b2_ref, mean_ref, std_ref):
        # Layer 1, all members in one lane-dense matmul: (B, D) @ (D, E*H).
        h = jnp.dot(x_ref[...], w1_ref[...], preferred_element_type=jnp.float32)
        h = jnp.maximum(h + b1_ref[...], 0.0)                       # ReLU

        # Layer 2, block-diagonal fused matmul: (B, E*H) @ (E*H, E*C_pad).
        logits = jnp.dot(h, w2_ref[...], preferred_element_type=jnp.float32) + b2_ref[...]

        # Per-member numerically-stable softmax on lane-aligned 128-wide slices.
        # Pad-class lanes have bias -1e30 -> exp underflows to exactly 0.
        sms = []
        for e in range(E):                                          # static unroll (E small)
            lg = logits[:, e * C_pad:(e + 1) * C_pad]               # (B, C_pad), vreg-aligned
            m = jnp.max(lg, axis=-1, keepdims=True)
            ex = jnp.exp(lg - m)
            inv = pl.reciprocal(jnp.sum(ex, axis=-1, keepdims=True), approx=False)
            sms.append(ex * inv)

        # Ensemble mean / population std (torch.std(..., unbiased=False)).
        inv_e = jnp.float32(1.0 / E)
        mean = sms[0]
        for e in range(1, E):
            mean = mean + sms[e]
        mean = mean * inv_e
        var = (sms[0] - mean) ** 2
        for e in range(1, E):
            var = var + (sms[e] - mean) ** 2
        var = var * inv_e

        mean_ref[...] = mean.astype(mean_ref.dtype)
        std_ref[...] = jnp.sqrt(var).astype(std_ref.dtype)

    return kernel


def combined_posterior_forward(x_nchw, w1, b1, w2, b2):
    """x_nchw: [B, 1, H, W] float32. Params stacked over ensemble axis E:
       w1: (E, D, H), b1: (E, H), w2: (E, H, C), b2: (E, C)."""
    B = x_nchw.shape[0]
    x = x_nchw.reshape(B, -1).astype(jnp.float32)                   # torch x.view(B, -1)
    E, D, H = w1.shape
    C = w2.shape[-1]
    C_pad = 128                                                     # lane-dense per-member class width

    # Fused first-layer weights: member e occupies columns e*H:(e+1)*H.
    w1f = jnp.transpose(w1, (1, 0, 2)).reshape(D, E * H).astype(jnp.float32)
    b1f = b1.reshape(1, E * H).astype(jnp.float32)

    # Block-diagonal second-layer weights, zero-padded to 128 class lanes per member.
    w2blk = jnp.zeros((E * H, E * C_pad), jnp.float32)
    b2pad = jnp.full((1, E * C_pad), -1e30, jnp.float32)            # pad classes -> exp() == 0
    for e in range(E):
        w2blk = w2blk.at[e * H:(e + 1) * H, e * C_pad:e * C_pad + C].set(w2[e].astype(jnp.float32))
        b2pad = b2pad.at[0, e * C_pad:e * C_pad + C].set(b2[e].astype(jnp.float32))

    cost = pl.CostEstimate(
        flops=int(2 * B * D * (E * H) + 2 * B * (E * H) * (E * C_pad)),
        transcendentals=int(B * E * C_pad),
        bytes_accessed=int(4 * (x.size + w1f.size + b1f.size + w2blk.size + b2pad.size
                                + 2 * B * C_pad)),
    )

    vmem_spec = pl.BlockSpec(memory_space=pltpu.MemorySpace.VMEM)   # whole array, VMEM-resident
    mean_p, std_p = pl.pallas_call(
        _make_fused_kernel(E, C_pad),
        out_shape=(
            jax.ShapeDtypeStruct((B, C_pad), jnp.float32),
            jax.ShapeDtypeStruct((B, C_pad), jnp.float32),
        ),
        in_specs=[vmem_spec] * 5,
        out_specs=(vmem_spec, vmem_spec),
        cost_estimate=cost,
    )(x, w1f, b1f, w2blk, b2pad)

    return mean_p[:, :C], std_p[:, :C]


def _reference_forward(x_nchw, w1, b1, w2, b2):
    """Pure-JAX reference mirroring the PyTorch module."""
    B = x_nchw.shape[0]
    x = x_nchw.reshape(B, -1).astype(jnp.float32)
    outs = []
    for e in range(w1.shape[0]):
        h = jnp.maximum(x @ w1[e] + b1[e], 0.0)
        logits = h @ w2[e] + b2[e]
        outs.append(jax.nn.softmax(logits, axis=-1))
    cat = jnp.stack(outs, axis=2)                                   # [B, C, E]
    return jnp.mean(cat, axis=2), jnp.std(cat, axis=2)              # unbiased=False


if __name__ == "__main__":
    # Small deterministic shapes consistent with the MNIST-style forward.
    B, CH, HW = 8, 1, 16          # x: NCHW [8, 1, 16, 16]
    D = CH * HW * HW              # 256 flattened features
    HID = 32                      # hidden width of each member MLP
    C = 10                        # classes
    E = 4                         # ensemble members  (E*HID = 128 -> lane-dense fused hidden)

    key = jax.random.PRNGKey(0)
    kx, k1, k2, k3, k4 = jax.random.split(key, 5)
    x = jax.random.normal(kx, (B, CH, HW, HW), dtype=jnp.float32)
    w1 = 0.05 * jax.random.normal(k1, (E, D, HID), dtype=jnp.float32)
    b1 = 0.05 * jax.random.normal(k2, (E, HID), dtype=jnp.float32)
    w2 = 0.05 * jax.random.normal(k3, (E, HID, C), dtype=jnp.float32)
    b2 = 0.05 * jax.random.normal(k4, (E, C), dtype=jnp.float32)

    mean, std = combined_posterior_forward(x, w1, b1, w2, b2)
    jax.block_until_ready((mean, std))

    ref_mean, ref_std = _reference_forward(x, w1, b1, w2, b2)
    np.testing.assert_allclose(np.asarray(mean), np.asarray(ref_mean), rtol=1e-5, atol=1e-5)
    np.testing.assert_allclose(np.asarray(std), np.asarray(ref_std), rtol=1e-5, atol=1e-5)

    print("KERNEL_OK")
</pallas_src>

<mosaic_0001>
module attributes {stable_mosaic.version = 11 : i64} {
  func.func @kernel(%arg0: memref<8x256xf32, #tpu.memory_space<vmem>>, %arg1: memref<256x128xf32, #tpu.memory_space<vmem>>, %arg2: memref<1x128xf32, #tpu.memory_space<vmem>>, %arg3: memref<128x512xf32, #tpu.memory_space<vmem>>, %arg4: memref<1x512xf32, #tpu.memory_space<vmem>>, %arg5: memref<8x128xf32, #tpu.memory_space<vmem>>, %arg6: memref<8x128xf32, #tpu.memory_space<vmem>>) attributes {dimension_semantics = [], scalar_prefetch = 0 : i64, scratch_operands = 0 : i64, tpu.core_type = #tpu.core_type<tc>} {
    %c0 = arith.constant 0 : index
    %c0_0 = arith.constant 0 : index
    %0 = vector.load %arg0[%c0, %c0_0] : memref<8x256xf32, #tpu.memory_space<vmem>>, vector<8x256xf32>
    %c0_1 = arith.constant 0 : index
    %c0_2 = arith.constant 0 : index
    %1 = vector.load %arg1[%c0_1, %c0_2] : memref<256x128xf32, #tpu.memory_space<vmem>>, vector<256x128xf32>
    %cst = arith.constant dense<0.000000e+00> : vector<8x128xf32>
    %2 = tpu.matmul %0, %1, %cst {dimension_numbers = #tpu.dot_dimension_numbers<[1], [0], [0], [1], [0, 0, 1, 1], [], []>} : vector<8x256xf32>, vector<256x128xf32>, vector<8x128xf32> -> vector<8x128xf32>
    %c0_3 = arith.constant 0 : index
    %c0_4 = arith.constant 0 : index
    %3 = vector.load %arg2[%c0_3, %c0_4] : memref<1x128xf32, #tpu.memory_space<vmem>>, vector<1x128xf32>
    %4 = vector.broadcast %3 : vector<1x128xf32> to vector<8x128xf32>
    %5 = arith.addf %2, %4 : vector<8x128xf32>
    %cst_5 = arith.constant 0.000000e+00 : f32
    %6 = vector.broadcast %cst_5 : f32 to vector<8x128xf32>
    %7 = arith.maximumf %5, %6 : vector<8x128xf32>
    %c0_6 = arith.constant 0 : index
    %c0_7 = arith.constant 0 : index
    %8 = vector.load %arg3[%c0_6, %c0_7] : memref<128x512xf32, #tpu.memory_space<vmem>>, vector<128x512xf32>
    %cst_8 = arith.constant dense<0.000000e+00> : vector<8x512xf32>
    %9 = tpu.matmul %7, %8, %cst_8 {dimension_numbers = #tpu.dot_dimension_numbers<[1], [0], [0], [1], [0, 0, 1, 1], [], []>} : vector<8x128xf32>, vector<128x512xf32>, vector<8x512xf32> -> vector<8x512xf32>
    %c0_9 = arith.constant 0 : index
    %c0_10 = arith.constant 0 : index
    %10 = vector.load %arg4[%c0_9, %c0_10] : memref<1x512xf32, #tpu.memory_space<vmem>>, vector<1x512xf32>
    %11 = vector.broadcast %10 : vector<1x512xf32> to vector<8x512xf32>
    %12 = arith.addf %9, %11 : vector<8x512xf32>
    %13 = vector.extract_strided_slice %12 {offsets = [0, 0], sizes = [8, 128], strides = [1, 1]} : vector<8x512xf32> to vector<8x128xf32>
    %cst_11 = arith.constant dense<0xFF800000> : vector<8xf32>
    %14 = vector.multi_reduction <maximumf>, %13, %cst_11 [1] : vector<8x128xf32> to vector<8xf32>
    %15 = vector.shape_cast %14 : vector<8xf32> to vector<8x1xf32>
    %16 = vector.broadcast %15 : vector<8x1xf32> to vector<8x128xf32>
    %17 = arith.subf %13, %16 : vector<8x128xf32>
    %18 = math.exp %17 : vector<8x128xf32>
    %cst_12 = arith.constant dense<0.000000e+00> : vector<8xf32>
    %19 = vector.multi_reduction <add>, %18, %cst_12 [1] : vector<8x128xf32> to vector<8xf32>
    %20 = vector.shape_cast %19 : vector<8xf32> to vector<8x1xf32>
    %21 = tpu.reciprocal %20 : vector<8x1xf32> -> vector<8x1xf32>
    %22 = vector.broadcast %21 : vector<8x1xf32> to vector<8x128xf32>
    %23 = arith.mulf %18, %22 : vector<8x128xf32>
    %24 = vector.extract_strided_slice %12 {offsets = [0, 128], sizes = [8, 128], strides = [1, 1]} : vector<8x512xf32> to vector<8x128xf32>
    %cst_13 = arith.constant dense<0xFF800000> : vector<8xf32>
    %25 = vector.multi_reduction <maximumf>, %24, %cst_13 [1] : vector<8x128xf32> to vector<8xf32>
    %26 = vector.shape_cast %25 : vector<8xf32> to vector<8x1xf32>
    %27 = vector.broadcast %26 : vector<8x1xf32> to vector<8x128xf32>
    %28 = arith.subf %24, %27 : vector<8x128xf32>
    %29 = math.exp %28 : vector<8x128xf32>
    %cst_14 = arith.constant dense<0.000000e+00> : vector<8xf32>
    %30 = vector.multi_reduction <add>, %29, %cst_14 [1] : vector<8x128xf32> to vector<8xf32>
    %31 = vector.shape_cast %30 : vector<8xf32> to vector<8x1xf32>
    %32 = tpu.reciprocal %31 : vector<8x1xf32> -> vector<8x1xf32>
    %33 = vector.broadcast %32 : vector<8x1xf32> to vector<8x128xf32>
    %34 = arith.mulf %29, %33 : vector<8x128xf32>
    %35 = vector.extract_strided_slice %12 {offsets = [0, 256], sizes = [8, 128], strides = [1, 1]} : vector<8x512xf32> to vector<8x128xf32>
    %cst_15 = arith.constant dense<0xFF800000> : vector<8xf32>
    %36 = vector.multi_reduction <maximumf>, %35, %cst_15 [1] : vector<8x128xf32> to vector<8xf32>
    %37 = vector.shape_cast %36 : vector<8xf32> to vector<8x1xf32>
    %38 = vector.broadcast %37 : vector<8x1xf32> to vector<8x128xf32>
    %39 = arith.subf %35, %38 : vector<8x128xf32>
    %40 = math.exp %39 : vector<8x128xf32>
    %cst_16 = arith.constant dense<0.000000e+00> : vector<8xf32>
    %41 = vector.multi_reduction <add>, %40, %cst_16 [1] : vector<8x128xf32> to vector<8xf32>
    %42 = vector.shape_cast %41 : vector<8xf32> to vector<8x1xf32>
    %43 = tpu.reciprocal %42 : vector<8x1xf32> -> vector<8x1xf32>
    %44 = vector.broadcast %43 : vector<8x1xf32> to vector<8x128xf32>
    %45 = arith.mulf %40, %44 : vector<8x128xf32>
    %46 = vector.extract_strided_slice %12 {offsets = [0, 384], sizes = [8, 128], strides = [1, 1]} : vector<8x512xf32> to vector<8x128xf32>
    %cst_17 = arith.constant dense<0xFF800000> : vector<8xf32>
    %47 = vector.multi_reduction <maximumf>, %46, %cst_17 [1] : vector<8x128xf32> to vector<8xf32>
    %48 = vector.shape_cast %47 : vector<8xf32> to vector<8x1xf32>
    %49 = vector.broadcast %48 : vector<8x1xf32> to vector<8x128xf32>
    %50 = arith.subf %46, %49 : vector<8x128xf32>
    %51 = math.exp %50 : vector<8x128xf32>
    %cst_18 = arith.constant dense<0.000000e+00> : vector<8xf32>
    %52 = vector.multi_reduction <add>, %51, %cst_18 [1] : vector<8x128xf32> to vector<8xf32>
    %53 = vector.shape_cast %52 : vector<8xf32> to vector<8x1xf32>
    %54 = tpu.reciprocal %53 : vector<8x1xf32> -> vector<8x1xf32>
    %55 = vector.broadcast %54 : vector<8x1xf32> to vector<8x128xf32>
    %56 = arith.mulf %51, %55 : vector<8x128xf32>
    %57 = arith.addf %23, %34 : vector<8x128xf32>
    %58 = arith.addf %57, %45 : vector<8x128xf32>
    %59 = arith.addf %58, %56 : vector<8x128xf32>
    %cst_19 = arith.constant 2.500000e-01 : f32
    %60 = vector.broadcast %cst_19 : f32 to vector<8x128xf32>
    %61 = arith.mulf %59, %60 : vector<8x128xf32>
    %62 = arith.subf %23, %61 : vector<8x128xf32>
    %63 = arith.mulf %62, %62 : vector<8x128xf32>
    %64 = arith.subf %34, %61 : vector<8x128xf32>
    %65 = arith.mulf %64, %64 : vector<8x128xf32>
    %66 = arith.addf %63, %65 : vector<8x128xf32>
    %67 = arith.subf %45, %61 : vector<8x128xf32>
    %68 = arith.mulf %67, %67 : vector<8x128xf32>
    %69 = arith.addf %66, %68 : vector<8x128xf32>
    %70 = arith.subf %56, %61 : vector<8x128xf32>
    %71 = arith.mulf %70, %70 : vector<8x128xf32>
    %72 = arith.addf %69, %71 : vector<8x128xf32>
    %cst_20 = arith.constant 2.500000e-01 : f32
    %73 = vector.broadcast %cst_20 : f32 to vector<8x128xf32>
    %74 = arith.mulf %72, %73 : vector<8x128xf32>
    %c0_21 = arith.constant 0 : index
    %c0_22 = arith.constant 0 : index
    %75 = vector.load %arg5[%c0_21, %c0_22] : memref<8x128xf32, #tpu.memory_space<vmem>>, vector<8x128xf32>
    tpu.vector_store %arg5[%c0_21, %c0_22], %61 {strides = array<i32>} : memref<8x128xf32, #tpu.memory_space<vmem>>, vector<8x128xf32>,
    %76 = math.sqrt %74 : vector<8x128xf32>
    %c0_23 = arith.constant 0 : index
    %c0_24 = arith.constant 0 : index
    %77 = vector.load %arg6[%c0_23, %c0_24] : memref<8x128xf32, #tpu.memory_space<vmem>>, vector<8x128xf32>
    tpu.vector_store %arg6[%c0_23, %c0_24], %76 {strides = array<i32>} : memref<8x128xf32, #tpu.memory_space<vmem>>, vector<8x128xf32>,
    return
  }
}

</mosaic_0001>

<bundles_post_ra>
// kernel: tpu_custom_call.1
= control target key start
LH: loop header
LB: loop body
LE: loop exit
PB: predicated region body
PF: predicated region fallthrough
CT: control target
= control target key end

     0   :  { %12 = vsyncpa [#allocation3], 0  ;;  %s883_s0 = inlined_call_operand.hbm [shape: f32[8,256], index: 0, kind: input, shape index: {}]   ;;  %s884_s1 = inlined_call_operand.hbm [shape: f32[256,128], index: 1, kind: input, shape index: {}]   ;;  %s885_s2 = inlined_call_operand.vmem [shape: f32[1,128], index: 2, kind: input, shape index: {}]   ;;  %s886_s3 = inlined_call_operand.hbm [shape: f32[128,512], index: 3, kind: input, shape index: {}]   ;;  %s887_s4 = inlined_call_operand.vmem [shape: f32[1,512], index: 4, kind: input, shape index: {}]   ;;  %s888_s5 = inlined_call_operand.hbm [shape: f32[8,128], index: 5, kind: output, shape index: {0}]   ;;  %s889_s6 = inlined_call_operand.hbm [shape: f32[8,128], index: 6, kind: output, shape index: {1}]  }
   0x1   :  { %13 = vsyncpa [#allocation6], 0 }
   0x2   :  { %14 = vsyncpa [#allocation4], 0 }
   0x3   :  { %15 = vsyncpa [#allocation10], 0  ;;  %s772_s21 = smov [#allocation5]   ;;  %s654_s25 = scalar_lea.hbm %s884_s1, 4096 }
   0x4   :  { %s31_s22 = sshll.u32 %s772_s21, 4  ;;  %p655_p0 = scmp.ne.s32.totalorder %s884_s1, %s654_s25  ;;  %s32_s22 = int_to_ptr.vmem [resolvable:$true] %s31_s22 }
   0x5   :  { %p658_p1 = scmp.lt.u32.totalorder %s654_s25, %s884_s1 }
   0x7   :  { %p660_p2 = pnand %p658_p1, %p655_p0 }
   0x9   :  { %663 = shalt.err (!%p660_p2)
}
   0xa   :  { %s664_s30 = scalar_lea.vmem %s32_s22, 4096  ;;  %p669_p4 = scmp.lt.s32.totalorder %s32_s22, %s32_s22 }
   0xb   :  { %p665_p3 = scmp.ne.s32.totalorder %s32_s22, %s664_s30  ;;  %p670_p5 = scmp.lt.s32.totalorder %s664_s30, %s664_s30 }
   0xd   :  { %p671_p6 = por %p670_p5, %p669_p4 }
   0xf   :  { %p672_p7 = pnand %p671_p6, %p665_p3 }
  0x11   :  { %675 = shalt.err (!%p672_p7)
}
  0x12   :  { %s773_s7 = smov 128   ;;  %s774_s8 = smov 8  }
  0x13   :  { %37 = dma.hbm_to_vmem [thread:$0]  %s884_s1, 4096, %s32_s22, [#allocation6], %s773_s7, %s773_s7, %s774_s8  }
  0x14   :  { %s775_s11 = smov [#allocation2]   ;;  %s776_s13 = smov [#allocation7]  }
  0x15   :  { %s22_s12 = sshll.u32 %s775_s11, 4  ;;  %s45_s14 = sshll.u32 %s776_s13, 4  ;;  %s23_s12 = int_to_ptr.vmem [resolvable:$true] %s22_s12  ;;  %s46_s14 = int_to_ptr.vmem [resolvable:$true] %s45_s14 }
  0x16   :  { %s676_s17 = scalar_lea.hbm %s883_s0, 256 }
  0x17   :  { %p677_p8 = scmp.ne.s32.totalorder %s883_s0, %s676_s17  ;;  %p680_p9 = scmp.lt.u32.totalorder %s676_s17, %s883_s0 }
  0x19   :  { %p682_p10 = pnand %p680_p9, %p677_p8 }
  0x1b   :  { %685 = shalt.err (!%p682_p10)
}
  0x1c   :  { %s686_s1 = scalar_lea.vmem %s23_s12, 256  ;;  %p691_p12 = scmp.lt.s32.totalorder %s23_s12, %s23_s12 }
  0x1d   :  { %p687_p11 = scmp.ne.s32.totalorder %s23_s12, %s686_s1  ;;  %p692_p13 = scmp.lt.s32.totalorder %s686_s1, %s686_s1 }
  0x1f   :  { %p693_p0 = por %p692_p13, %p691_p12 }
  0x21   :  { %p694_p1 = pnand %p693_p0, %p687_p11 }
  0x23   :  { %697 = shalt.err (!%p694_p1)
}
  0x24   :  { %25 = dma.hbm_to_vmem [thread:$0]  %s883_s0, 256, %s23_s12, [#allocation3]  }
  0x25   :  { %s698_s26 = scalar_lea.hbm %s886_s3, 8192 }
  0x26   :  { %p699_p2 = scmp.ne.s32.totalorder %s886_s3, %s698_s26  ;;  %p702_p3 = scmp.lt.u32.totalorder %s698_s26, %s886_s3 }
  0x28   :  { %p704_p4 = pnand %p702_p3, %p699_p2 }
  0x2a   :  { %707 = shalt.err (!%p704_p4)
}
  0x2b   :  { %s708_s7 = scalar_lea.vmem %s46_s14, 8192  ;;  %p713_p6 = scmp.lt.s32.totalorder %s46_s14, %s46_s14 }
  0x2c   :  { %p709_p5 = scmp.ne.s32.totalorder %s46_s14, %s708_s7  ;;  %p714_p7 = scmp.lt.s32.totalorder %s708_s7, %s708_s7 }
  0x2e   :  { %p715_p8 = por %p714_p7, %p713_p6 }
  0x30   :  { %p716_p9 = pnand %p715_p8, %p709_p5 }
  0x32   :  { %719 = shalt.err (!%p716_p9)
}
  0x33   :  { %s777_s0 = smov 512   ;;  %s778_s8 = smov 32  }
  0x34   :  { %51 = dma.hbm_to_vmem [thread:$0]  %s886_s3, 8192, %s46_s14, [#allocation6], %s777_s0, %s777_s0, %s778_s8  }
  0x35   :  { %764 = dma.done.wait [#allocation3], 256  }
  0x36   :  { %765 = vsyncadd [#allocation3], 4294967040 }
  0x37   :  { %766 = dma.done.wait [#allocation6], 12288  }
  0x38   :  { %767 = vsyncadd [#allocation6], 4294955008  ;;  %v81_v0 = vld [vmem:[#allocation5 + $0x80] sm:$0xff]  ;;  %v82_v1 = vld [vmem:[#allocation5 + $0x88] sm:$0xff] }
  0x39   :  { %v65_v2 = vld [vmem:[#allocation5] sm:$0xff]  ;;  %v530_v3 = vpack.c.bf16 %v82_v1, %v81_v0  ;;  %v66_v4 = vld [vmem:[#allocation5 + $0x8] sm:$0xff]  ;;  %v83_v5 = vld [vmem:[#allocation5 + $0x90] sm:$0xff] }
  0x3a   :  { %v84_v6 = vld [vmem:[#allocation5 + $0x98] sm:$0xff]  ;;  %v532_v7 = vpack.c.bf16 %v66_v4, %v65_v2  ;;  %v67_v9 = vld [vmem:[#allocation5 + $0x10] sm:$0xff]  ;;  %v85_v11 = vld [vmem:[#allocation5 + $0xa0] sm:$0xff] }
  0x3b   :  { %v534_v8 = vpack.c.bf16 %v84_v6, %v83_v5  ;;  %v68_v10 = vld [vmem:[#allocation5 + $0x18] sm:$0xff]  ;;  %531 = vmatprep.subr.bf16.mxu0 %v530_v3  ;;  %v86_v12 = vld [vmem:[#allocation5 + $0xa8] sm:$0xff]  ;;  %v69_v15 = vld [vmem:[#allocation5 + $0x20] sm:$0xff] }
  0x3c   :  { %533 = vmatpush3.bf16.msra.mxu0 %v532_v7  ;;  %v536_v13 = vpack.c.bf16 %v68_v10, %v67_v9  ;;  %v538_v14 = vpack.c.bf16 %v86_v12, %v85_v11  ;;  %v70_v16 = vld [vmem:[#allocation5 + $0x28] sm:$0xff]  ;;  %v87_v17 = vld [vmem:[#allocation5 + $0xb0] sm:$0xff]  ;;  %v88_v18 = vld [vmem:[#allocation5 + $0xb8] sm:$0xff] }
  0x3d   :  { %535 = vmatprep.subr.bf16.mxu0 %v534_v8  ;;  %v540_v19 = vpack.c.bf16 %v70_v16, %v69_v15  ;;  %v542_v20 = vpack.c.bf16 %v88_v18, %v87_v17  ;;  %v71_v21 = vld [vmem:[#allocation5 + $0x30] sm:$0xff]  ;;  %v72_v22 = vld [vmem:[#allocation5 + $0x38] sm:$0xff]  ;;  %v89_v23 = vld [vmem:[#allocation5 + $0xc0] sm:$0xff] }
  0x3e   :  { %v90_v24 = vld [vmem:[#allocation5 + $0xc8] sm:$0xff]  ;;  %v64_v25 = vld [vmem:[#allocation2 + $0x8] sm:$0xff]  ;;  %v544_v28 = vpack.c.bf16 %v72_v22, %v71_v21  ;;  %v73_v29 = vld [vmem:[#allocation5 + $0x40] sm:$0xff] }
  0x3f   :  { %168 = vmatprep.mubr.f32.mxu0 %v64_v25  ;;  %v176_v26 = vld [vmem:[#allocation7 + $0x8] sm:$0xff]  ;;  %v175_v31 = vld [vmem:[#allocation7] sm:$0xff]  ;;  %v546_v32 = vpack.c.bf16 %v90_v24, %v89_v23  ;;  %v91_v34 = vld [vmem:[#allocation5 + $0xd0] sm:$0xff] }
  0x40   :  { %537 = vmatpush3.bf16.msra.mxu0 %v536_v13  ;;  %v180_v27 = vld [vmem:[#allocation7 + $0x28] sm:$0xff]  ;;  %v179_v35 = vld [vmem:[#allocation7 + $0x20] sm:$0xff]  ;;  %v92_v36 = vld [vmem:[#allocation5 + $0xd8] sm:$0xff] }
  0x41   :  { %539 = vmatprep.subr.bf16.mxu0 %v538_v14  ;;  %v562_v30 = vpack.c.bf16 %v180_v27, %v176_v26  ;;  %v74_v33 = vld [vmem:[#allocation5 + $0x48] sm:$0xff]  ;;  %v564_v37 = vpack.c.bf16 %v179_v35, %v175_v31  ;;  %v183_v41 = vld [vmem:[#allocation7 + $0x40] sm:$0xff]  ;;  %v75_v44 = vld [vmem:[#allocation5 + $0x50] sm:$0xff]  ;;  %v550_v47 = vpack.c.bf16 %v92_v36, %v91_v34 }
  0x42   :  { %v184_v38 = vld [vmem:[#allocation7 + $0x48] sm:$0xff]  ;;  %v187_v42 = vld [vmem:[#allocation7 + $0x60] sm:$0xff]  ;;  %v548_v43 = vpack.c.bf16 %v74_v33, %v73_v29  ;;  %v76_v48 = vld [vmem:[#allocation5 + $0x58] sm:$0xff] }
  0x43   :  { %563 = vmatprep.subr.bf16.mxu1 %v562_v30  ;;  %v188_v39 = vld [vmem:[#allocation7 + $0x68] sm:$0xff]  ;;  %v568_v45 = vpack.c.bf16 %v187_v42, %v183_v41  ;;  %v93_v49 = vld [vmem:[#allocation5 + $0xe0] sm:$0xff]  ;;  %v552_v57 = vpack.c.bf16 %v76_v48, %v75_v44  ;;  %v95_v62 = vld [vmem:[#allocation5 + $0xf0] sm:$0xff] }
  0x44   :  { %541 = vmatpush3.bf16.msra.mxu0 %v540_v19  ;;  %v566_v40 = vpack.c.bf16 %v188_v39, %v184_v38  ;;  %565 = vmatpush1.bf16.msra.mxu1 %v564_v37  ;;  %v192_v46 = vld [vmem:[#allocation7 + $0x88] sm:$0xff]  ;;  %v191_v53 = vld [vmem:[#allocation7 + $0x80] sm:$0xff]  ;;  %v96_v2 = vld [vmem:[#allocation5 + $0xf8] sm:$0xff] }
  0x45   :  { %543 = vmatprep.subr.bf16.mxu0 %v542_v20  ;;  %v196_v50 = vld [vmem:[#allocation7 + $0xa8] sm:$0xff]  ;;  %v195_v54 = vld [vmem:[#allocation7 + $0xa0] sm:$0xff]  ;;  %v79_v6 = vld [vmem:[#allocation5 + $0x70] sm:$0xff]  ;;  %v558_v9 = vpack.c.bf16 %v96_v2, %v95_v62 }
  0x46   :  { %567 = vmatprep.subr.bf16.mxu1 %v566_v40  ;;  %v94_v51 = vld [vmem:[#allocation5 + $0xe8] sm:$0xff]  ;;  %v570_v52 = vpack.c.bf16 %v196_v50, %v192_v46  ;;  %v77_v58 = vld [vmem:[#allocation5 + $0x60] sm:$0xff]  ;;  %v572_v60 = vpack.c.bf16 %v195_v54, %v191_v53  ;;  %v80_v7 = vld [vmem:[#allocation5 + $0x78] sm:$0xff] }
  0x47   :  { %v200_v55 = vld [vmem:[#allocation7 + $0xc8] sm:$0xff]  ;;  %v554_v61 = vpack.c.bf16 %v94_v51, %v93_v49  ;;  %v199_v0 = vld [vmem:[#allocation7 + $0xc0] sm:$0xff]  ;;  %v178_v10 = vld [vmem:[#allocation7 + $0x18] sm:$0xff]  ;;  %v560_v17 = vpack.c.bf16 %v80_v7, %v79_v6 }
  0x48   :  { %545 = vmatpush3.bf16.msra.mxu0 %v544_v28  ;;  %v204_v56 = vld [vmem:[#allocation7 + $0xe8] sm:$0xff]  ;;  %569 = vmatpush1.bf16.msra.mxu1 %v568_v45  ;;  %v203_v1 = vld [vmem:[#allocation7 + $0xe0] sm:$0xff]  ;;  %v182_v14 = vld [vmem:[#allocation7 + $0x38] sm:$0xff] }
  0x49   :  { %547 = vmatprep.subr.bf16.mxu0 %v546_v32  ;;  %v78_v59 = vld [vmem:[#allocation5 + $0x68] sm:$0xff]  ;;  %571 = vmatprep.subr.bf16.mxu1 %v570_v52  ;;  %v574_v63 = vpack.c.bf16 %v204_v56, %v200_v55  ;;  %v576_v8 = vpack.c.bf16 %v203_v1, %v199_v0  ;;  %v207_v12 = vld [vmem:[#allocation7 + $0x100] sm:$0xff]  ;;  %v177_v18 = vld [vmem:[#allocation7 + $0x10] sm:$0xff]  ;;  %v594_v20 = vpack.c.bf16 %v182_v14, %v178_v10 }
  0x4a   :  { %v208_v3 = vld [vmem:[#allocation7 + $0x108] sm:$0xff]  ;;  %v556_v5 = vpack.c.bf16 %v78_v59, %v77_v58  ;;  %v211_v13 = vld [vmem:[#allocation7 + $0x120] sm:$0xff]  ;;  %v181_v21 = vld [vmem:[#allocation7 + $0x30] sm:$0xff] }
  0x4b   :  { %v212_v4 = vld [vmem:[#allocation7 + $0x128] sm:$0xff]  ;;  %v580_v19 = vpack.c.bf16 %v211_v13, %v207_v12  ;;  %v215_v23 = vld [vmem:[#allocation7 + $0x140] sm:$0xff]  ;;  %v186_v25 = vld [vmem:[#allocation7 + $0x58] sm:$0xff]  ;;  %v596_v28 = vpack.c.bf16 %v181_v21, %v177_v18  ;;  %v779_v18 = vmov 0.0  }
  0x4c   :  { %549 = vmatpush3.bf16.msra.mxu0 %v548_v43  ;;  %573 = vmatpush1.bf16.msra.mxu1 %v572_v60  ;;  %v578_v11 = vpack.c.bf16 %v212_v4, %v208_v3  ;;  %v216_v15 = vld [vmem:[#allocation7 + $0x148] sm:$0xff]  ;;  %v219_v24 = vld [vmem:[#allocation7 + $0x160] sm:$0xff]  ;;  %v190_v26 = vld [vmem:[#allocation7 + $0x78] sm:$0xff] }
  0x4d   :  { %551 = vmatprep.subr.bf16.mxu0 %v550_v47  ;;  %575 = vmatprep.subr.bf16.mxu1 %v574_v63  ;;  %v220_v16 = vld [vmem:[#allocation7 + $0x168] sm:$0xff]  ;;  %v63_v27 = vld [vmem:[#allocation2] sm:$0xff]  ;;  %v584_v29 = vpack.c.bf16 %v219_v24, %v215_v23  ;;  %v598_v30 = vpack.c.bf16 %v190_v26, %v186_v25  ;;  %v194_v33 = vld [vmem:[#allocation7 + $0x98] sm:$0xff]  ;;  %v241_v25 = vlaneseq }
  0x4e   :  { %v582_v22 = vpack.c.bf16 %v220_v16, %v216_v15  ;;  %v185_v31 = vld [vmem:[#allocation7 + $0x50] sm:$0xff]  ;;  %v198_v34 = vld [vmem:[#allocation7 + $0xb8] sm:$0xff]  ;;  %v224_v58 = vld [vmem:[#allocation7 + $0x188] sm:$0xff]  ;;  %325 = vmatprep.mubr.f32.mxu1 %v779_v18 }
  0x4f   :  { %v189_v32 = vld [vmem:[#allocation7 + $0x70] sm:$0xff]  ;;  %v602_v36 = vpack.c.bf16 %v198_v34, %v194_v33  ;;  %v202_v39 = vld [vmem:[#allocation7 + $0xd8] sm:$0xff]  ;;  %v228_v59 = vld [vmem:[#allocation7 + $0x1a8] sm:$0xff]  ;;  %v242_v26 = vshrl.u32 %v241_v25, 7 }
  0x50   :  { %553 = vmatpush3.bf16.msra.mxu0 %v552_v57  ;;  %577 = vmatpush1.bf16.msra.mxu1 %v576_v8  ;;  %v600_v35 = vpack.c.bf16 %v189_v32, %v185_v31  ;;  %v193_v37 = vld [vmem:[#allocation7 + $0x90] sm:$0xff]  ;;  %v206_v40 = vld [vmem:[#allocation7 + $0xf8] sm:$0xff]  ;;  %v223_v63 = vld [vmem:[#allocation7 + $0x180] sm:$0xff] }
  0x51   :  { %555 = vmatprep.subr.bf16.mxu0 %v554_v61  ;;  %579 = vmatprep.subr.bf16.mxu1 %v578_v11  ;;  %v197_v38 = vld [vmem:[#allocation7 + $0xb0] sm:$0xff]  ;;  %v606_v42 = vpack.c.bf16 %v206_v40, %v202_v39  ;;  %v210_v45 = vld [vmem:[#allocation7 + $0x118] sm:$0xff]  ;;  %v586_v61 = vpack.c.bf16 %v228_v59, %v224_v58  ;;  %v227_v0 = vld [vmem:[#allocation7 + $0x1a0] sm:$0xff]  ;;  %v247_v32 = vsub.s32 1, %v242_v26  ;;  %v255_v33 = vsub.s32 3, %v242_v26 }
  0x52   :  { %v604_v41 = vpack.c.bf16 %v197_v38, %v193_v37  ;;  %v201_v43 = vld [vmem:[#allocation7 + $0xd0] sm:$0xff]  ;;  %v214_v46 = vld [vmem:[#allocation7 + $0x138] sm:$0xff]  ;;  %v588_v2 = vpack.c.bf16 %v227_v0, %v223_v63  ;;  %v232_v6 = vld [vmem:[#allocation7 + $0x1c8] sm:$0xff] }
  0x53   :  { %v205_v44 = vld [vmem:[#allocation7 + $0xf0] sm:$0xff]  ;;  %v610_v48 = vpack.c.bf16 %v214_v46, %v210_v45  ;;  %v218_v51 = vld [vmem:[#allocation7 + $0x158] sm:$0xff]  ;;  %v236_v7 = vld [vmem:[#allocation7 + $0x1e8] sm:$0xff] }
  0x54   :  { %557 = vmatpush3.bf16.msra.mxu0 %v556_v5  ;;  %581 = vmatpush1.bf16.msra.mxu1 %v580_v19  ;;  %v608_v47 = vpack.c.bf16 %v205_v44, %v201_v43  ;;  %v209_v49 = vld [vmem:[#allocation7 + $0x110] sm:$0xff]  ;;  %v222_v52 = vld [vmem:[#allocation7 + $0x178] sm:$0xff]  ;;  %v231_v11 = vld [vmem:[#allocation7 + $0x1c0] sm:$0xff] }
  0x55   :  { %559 = vmatprep.subr.bf16.mxu0 %v558_v9  ;;  %583 = vmatprep.subr.bf16.mxu1 %v582_v22  ;;  %v213_v50 = vld [vmem:[#allocation7 + $0x130] sm:$0xff]  ;;  %v614_v54 = vpack.c.bf16 %v222_v52, %v218_v51  ;;  %v226_v60 = vld [vmem:[#allocation7 + $0x198] sm:$0xff]  ;;  %v590_v9 = vpack.c.bf16 %v236_v7, %v232_v6  ;;  %v235_v12 = vld [vmem:[#allocation7 + $0x1e0] sm:$0xff] }
  0x56   :  { %v612_v53 = vpack.c.bf16 %v213_v50, %v209_v49  ;;  %v217_v55 = vld [vmem:[#allocation7 + $0x150] sm:$0xff]  ;;  %v230_v62 = vld [vmem:[#allocation7 + $0x1b8] sm:$0xff]  ;;  %v592_v14 = vpack.c.bf16 %v235_v12, %v231_v11 }
  0x57   :  { %v221_v56 = vld [vmem:[#allocation7 + $0x170] sm:$0xff]  ;;  %v618_v1 = vpack.c.bf16 %v230_v62, %v226_v60  ;;  %v234_v8 = vld [vmem:[#allocation7 + $0x1d8] sm:$0xff] }
  0x58   :  { %561 = vmatpush3.bf16.msra.mxu0 %v560_v17  ;;  %585 = vmatpush1.bf16.msra.mxu1 %v584_v29  ;;  %v616_v57 = vpack.c.bf16 %v221_v56, %v217_v55  ;;  %v225_v3 = vld [vmem:[#allocation7 + $0x190] sm:$0xff]  ;;  %v238_v10 = vld [vmem:[#allocation7 + $0x1f8] sm:$0xff] }
  0x59   :  { %595 = vmatprep.subr.bf16.mxu0 %v594_v20  ;;  %v229_v4 = vld [vmem:[#allocation7 + $0x1b0] sm:$0xff]  ;;  %587 = vmatprep.subr.bf16.mxu1 %v586_v61  ;;  %v622_v13 = vpack.c.bf16 %v238_v10, %v234_v8 }
  0x5a   :  { %v620_v5 = vpack.c.bf16 %v229_v4, %v225_v3  ;;  %v233_v15 = vld [vmem:[#allocation7 + $0x1d0] sm:$0xff] }
  0x5b   :  { %169 = vmatmul.mubr.f32.vlgmr.msra.gmra.mrb[0].mxu0 %v63_v27  ;;  %v237_v16 = vld [vmem:[#allocation7 + $0x1f0] sm:$0xff]  ;;  %v243_v27 = vsub.s32 0, %v242_v26 }
  0x5c   :  { %597 = vmatpush1.bf16.msra.mxu0 %v596_v28  ;;  %589 = vmatpush1.bf16.msra.mxu1 %v588_v2  ;;  %v624_v17 = vpack.c.bf16 %v237_v16, %v233_v15  ;;  %v494_v20 = vld [vmem:[%s885_s2] ss:$0 sm:$0xff]  ;;  %v251_v28 = vsub.s32 2, %v242_v26  ;;  %s780_s2 = smov [#allocation8]  }
  0x5d   :  { %599 = vmatprep.subr.bf16.mxu0 %v598_v30  ;;  %591 = vmatprep.subr.bf16.mxu1 %v590_v9  ;;  %v239_v29 = vld [vmem:[%s887_s4] sm:$0xf]  ;;  %s470_s4 = sshll.u32 %s780_s2, 4  ;;  %s471_s4 = int_to_ptr.vmem [resolvable:$true] %s470_s4 }
  0x5e   :  { %396 = vmatprep.mubr.f32.mxu0 %v779_v18  ;;  %v244_v30 = vrot.slane %v239_v29, %v243_v27  ;;  %v252_v31 = vrot.slane %v239_v29, %v251_v28  ;;  %v248_v38 = vrot.slane %v239_v29, %v247_v32  ;;  %v256_v40 = vrot.slane %v239_v29, %v255_v33  ;;  %s720_s14 = scalar_lea.vmem %s471_s4, 128  ;;  %p725_p11 = scmp.lt.s32.totalorder %s471_s4, %s471_s4 }
  0x5f   :  { %p721_p10 = scmp.ne.s32.totalorder %s471_s4, %s720_s14  ;;  %p726_p12 = scmp.lt.s32.totalorder %s720_s14, %s720_s14 }
  0x60   :  { %601 = vmatpush1.bf16.msra.mxu0 %v600_v35  ;;  %593 = vmatpush1.bf16.msra.mxu1 %v592_v14 }
  0x61   :  { %603 = vmatprep.subr.bf16.mxu0 %v602_v36  ;;  %p727_p13 = por %p726_p12, %p725_p11 }
  0x63   :  { %p728_p0 = pnand %p727_p13, %p721_p10 }
  0x64   :  { %605 = vmatpush1.bf16.msra.mxu0 %v604_v41 }
  0x65   :  { %607 = vmatprep.subr.bf16.mxu0 %v606_v42 }
  0x68   :  { %609 = vmatpush1.bf16.msra.mxu0 %v608_v47 }
  0x69   :  { %611 = vmatprep.subr.bf16.mxu0 %v610_v48 }
  0x6c   :  { %613 = vmatpush1.bf16.msra.mxu0 %v612_v53 }
  0x6d   :  { %615 = vmatprep.subr.bf16.mxu0 %v614_v54 }
  0x70   :  { %617 = vmatpush1.bf16.msra.mxu0 %v616_v57 }
  0x71   :  { %619 = vmatprep.subr.bf16.mxu0 %v618_v1 }
  0x74   :  { %621 = vmatpush1.bf16.msra.mxu0 %v620_v5 }
  0x75   :  { %623 = vmatprep.subr.bf16.mxu0 %v622_v13 }
  0x78   :  { %625 = vmatpush1.bf16.msra.mxu0 %v624_v17 }
 0x12e   :  { %v527_v19 = vpop.f32.mrb[0].mxu0 }
 0x12f   :  { %v528_v21 = vpop.f32.mrb[1].mxu0 }
 0x130   :  { %v529_v22 = vadd.f32 %v528_v21, %v527_v19 }
 0x132   :  { %v171_v23 = vadd.f32 %v529_v22, %v494_v20 }
 0x134   :  { %v174_v24 = vmax.f32 %v171_v23, 0.0 }
 0x136   :  { %326 = vmatmul.mubr.f32.vlgmr.msra.gmra.mrb[0].mxu1 %v174_v24  ;;  %397 = vmatmul.mubr.f32.vlgmr.msra.gmra.mrb[2].mxu0 %v174_v24 }
 0x209   :  { %v327_v34 = vpop.f32.mrb[0].mxu1  ;;  %v398_v35 = vpop.f32.mrb[2].mxu0 }
 0x20a   :  { %v328_v36 = vadd.f32 %v327_v34, %v244_v30  ;;  %v399_v37 = vadd.f32 %v398_v35, %v252_v31  ;;  %v329_v39 = vpop.f32.mrb[1].mxu1  ;;  %v400_v41 = vpop.f32.mrb[3].mxu0 }
 0x20b   :  { %v330_v42 = vadd.f32 %v329_v39, %v248_v38  ;;  %v401_v43 = vadd.f32 %v400_v41, %v256_v40 }
 0x20c   :  { %421 = vmax.xlane.f32.xlu1 %v399_v37  ;;  %403 = vmax.xlane.f32.xlu0 %v328_v36 }
 0x210   :  { %430 = vmax.xlane.f32.xlu1 %v401_v43  ;;  %412 = vmax.xlane.f32.xlu0 %v330_v42 }
 0x299   :  { %v422_v44 = vpop.xlane.xlu1 %421  ;;  %v404_v45 = vpop.xlane.xlu0 %403 }
 0x29a   :  { %v423_v46 = vsub.f32 %v399_v37, %v422_v44  ;;  %v405_v47 = vsub.f32 %v328_v36, %v404_v45 }
 0x29c   :  { %v406_v48 = vmul.f32 1.442695, %v405_v47  ;;  %v424_v51 = vmul.f32 1.442695, %v423_v46 }
 0x29d   :  { %v431_v49 = vpop.xlane.xlu1 %430  ;;  %v413_v50 = vpop.xlane.xlu0 %412 }
 0x29e   :  { %v414_v52 = vsub.f32 %v330_v42, %v413_v50  ;;  %636 = vpow2.f32 %v406_v48  ;;  %v432_v53 = vsub.f32 %v401_v43, %v431_v49 }
 0x29f   :  { %638 = vpow2.f32 %v424_v51 }
 0x2a0   :  { %v415_v54 = vmul.f32 1.442695, %v414_v52  ;;  %v433_v55 = vmul.f32 1.442695, %v432_v53 }
 0x2a2   :  { %640 = vpow2.f32 %v415_v54 }
 0x2a3   :  { %642 = vpow2.f32 %v433_v55 }
 0x2a8   :  { %v637_v56 = vpop.eup %636 }
 0x2a9   :  { %408 = vadd.xlane.f32.xlu0 %v637_v56  ;;  %v639_v57 = vpop.eup %638 }
 0x2ac   :  { %v641_v58 = vpop.eup %640 }
 0x2ad   :  { %426 = vadd.xlane.f32.xlu0 %v639_v57  ;;  %417 = vadd.xlane.f32.xlu1 %v641_v58  ;;  %v643_v59 = vpop.eup %642 }
 0x2b1   :  { %435 = vadd.xlane.f32.xlu1 %v643_v59 }
 0x336   :  { %v409_v60 = vpop.xlane.xlu0 %408 }
 0x337   :  { %644 = vrcp.f32 %v409_v60 }
 0x33a   :  { %v418_v61 = vpop.xlane.xlu1 %417  ;;  %v427_v62 = vpop.xlane.xlu0 %426 }
 0x33b   :  { %646 = vrcp.f32 %v418_v61 }
 0x33c   :  { %648 = vrcp.f32 %v427_v62 }
 0x33e   :  { %v436_v63 = vpop.xlane.xlu1 %435 }
 0x33f   :  { %650 = vrcp.f32 %v436_v63 }
 0x341   :  { %v645_v0 = vpop.eup %644 }
 0x342   :  { %v411_v3 = vmul.f32 %v645_v0, %v637_v56 }
 0x345   :  { %v647_v1 = vpop.eup %646 }
 0x346   :  { %v649_v2 = vpop.eup %648  ;;  %v420_v4 = vmul.f32 %v647_v1, %v641_v58 }
 0x347   :  { %v429_v6 = vmul.f32 %v649_v2, %v639_v57 }
 0x348   :  { %v439_v5 = vadd.f32 %v420_v4, %v411_v3 }
 0x349   :  { %v651_v7 = vpop.eup %650 }
 0x34a   :  { %v440_v8 = vadd.f32 %v439_v5, %v429_v6  ;;  %v438_v9 = vmul.f32 %v651_v7, %v643_v59 }
 0x34c   :  { %v441_v10 = vadd.f32 %v440_v8, %v438_v9 }
 0x34e   :  { %v442_v11 = vmul.f32 0.25, %v441_v10 }
 0x350   :  { %v443_v12 = vsub.f32 %v411_v3, %v442_v11  ;;  %v445_v13 = vsub.f32 %v420_v4, %v442_v11  ;;  %v448_v14 = vsub.f32 %v429_v6, %v442_v11  ;;  %455 = vst [vmem:[#allocation8] sm:$0xff] %v442_v11 }
 0x351   :  { %731 = shalt.err (!%p728_p0)
}
 0x352   :  { %s732_s17 = scalar_lea.hbm %s888_s5, 128 }
 0x353   :  { %p733_p1 = scmp.ne.s32.totalorder %s888_s5, %s732_s17  ;;  %p736_p2 = scmp.lt.u32.totalorder %s732_s17, %s888_s5 }
 0x355   :  { %p738_p3 = pnand %p736_p2, %p733_p1 }
 0x357   :  { %741 = shalt.err (!%p738_p3)
}
 0x358   :  { %473 = dma.vmem_to_hbm [thread:$0]  %s471_s4, 128, %s888_s5, [#allocation4]   ;;  %v444_v15 = vmul.f32 %v443_v12, %v443_v12  ;;  %v446_v16 = vmul.f32 %v445_v13, %v445_v13  ;;  %v451_v17 = vsub.f32 %v438_v9, %v442_v11  ;;  %v449_v19 = vmul.f32 %v448_v14, %v448_v14 }
 0x359   :  { %s781_s23 = smov [#allocation9]  }
 0x35a   :  { %v447_v18 = vadd.f32 %v446_v16, %v444_v15  ;;  %v452_v21 = vmul.f32 %v451_v17, %v451_v17  ;;  %s480_s24 = sshll.u32 %s781_s23, 4  ;;  %s481_s24 = int_to_ptr.vmem [resolvable:$true] %s480_s24 }
 0x35b   :  { %s742_s5 = scalar_lea.vmem %s481_s24, 128  ;;  %p747_p5 = scmp.lt.s32.totalorder %s481_s24, %s481_s24 }
 0x35c   :  { %v450_v20 = vadd.f32 %v449_v19, %v447_v18  ;;  %p743_p4 = scmp.ne.s32.totalorder %s481_s24, %s742_s5  ;;  %p748_p6 = scmp.lt.s32.totalorder %s742_s5, %s742_s5 }
 0x35e   :  { %v453_v22 = vadd.f32 %v452_v21, %v450_v20  ;;  %p749_p7 = por %p748_p6, %p747_p5 }
 0x360   :  { %v454_v23 = vmul.f32 0.25, %v453_v22  ;;  %p750_p8 = pnand %p749_p7, %p743_p4 }
 0x362   :  { %652 = vrsqrt.f32 %v454_v23  ;;  %vm458_vm0 = vcmp.eq.f32.partialorder %v454_v23, inf  ;;  %v461_v26 = vand.u32 2147483648, %v454_v23  ;;  %vm460_vm1 = vcmp.eq.f32.partialorder %v454_v23, 0.0 }
 0x36c   :  { %v653_v24 = vpop.eup %652 }
 0x36d   :  { %v457_v25 = vmul.f32 %v653_v24, %v454_v23 }
 0x36f   :  { %v459_v27 = vsel %vm458_vm0, %v454_v23, %v457_v25 }
 0x370   :  { %v462_v28 = vsel %vm460_vm1, %v461_v26, %v459_v27 }
 0x371   :  { %463 = vst [vmem:[#allocation9] sm:$0xff] %v462_v28 }
 0x372   :  { %753 = shalt.err (!%p750_p8)
}
 0x373   :  { %s754_s27 = scalar_lea.hbm %s889_s6, 128 }
 0x374   :  { %p755_p9 = scmp.ne.s32.totalorder %s889_s6, %s754_s27  ;;  %p758_p10 = scmp.lt.u32.totalorder %s754_s27, %s889_s6 }
 0x376   :  { %p760_p11 = pnand %p758_p10, %p755_p9 }
 0x378   :  { %763 = shalt.err (!%p760_p11)
}
 0x379   :  { %483 = dma.vmem_to_hbm [thread:$0]  %s481_s24, 128, %s889_s6, [#allocation10]  }
 0x37a   :  { %768 = dma.done.wait [#allocation4], 128  }
 0x37b   :  { %769 = vsyncadd [#allocation4], 4294967168 }
 0x37c   :  { %770 = dma.done.wait [#allocation10], 128  }
 0x37d   :  { %771 = vsyncadd [#allocation10], 4294967168 }
 0x37e   :  { %490 = vsyncpa [#allocation3], 1 }
 0x37f   :  { %491 = vsyncpa [#allocation6], 1 }
 0x380   :  { %492 = vsyncpa [#allocation4], 1 }
 0x381   :  { %493 = vsyncpa [#allocation10], 1 }

</bundles_post_ra>
